<compile_context>
chip_gen: v7x
topology: tpu7x:2x2x1
jax: 0.10.0
libtpu: 0.0.40
codegen_flags: <defaults>
</compile_context>

<pallas_src>
import functools

import jax
import jax.numpy as jnp
from jax.experimental import pallas as pl
from jax.experimental.pallas import tpu as pltpu


def _round_up(x, m):
    return ((x + m - 1) // m) * m


def _softplus(x):
    # Numerically stable softplus using only ops with guaranteed Mosaic
    # lowering (max, abs, exp, log).  |error| vs exact <= ~1.2e-7 in f32.
    return jnp.maximum(x, 0.0) + jnp.log(1.0 + jnp.exp(-jnp.abs(x)))


def emitter_kernel(x_ref, w0_ref, b0_ref, w1_ref, b1_ref, w2_ref, b2_ref, o_ref):
    # x_ref:  (in_dim, bb)   -- batch on the 128-lane axis
    # wN_ref: (out_f, in_f)  -- PyTorch-native layout
    # bN_ref: (out_f, 1)     -- broadcasts across lanes
    h = jnp.dot(w0_ref[...], x_ref[...], preferred_element_type=jnp.float32)
    h = _softplus(h + b0_ref[...])                       # (hid, bb), f32
    h = jnp.dot(w1_ref[...], h.astype(w1_ref.dtype),
                preferred_element_type=jnp.float32)
    h = _softplus(h + b1_ref[...])                       # (hid, bb), f32
    y = jnp.dot(w2_ref[...], h.astype(w2_ref.dtype),
                preferred_element_type=jnp.float32) + b2_ref[...]
    o_ref[...] = y.astype(o_ref.dtype)                   # full-width lane store


@functools.partial(jax.jit, static_argnames=("block_b", "use_bf16"))
def emitter_forward(r, params, block_b=1024, use_bf16=False):
    """r: (B, input_dim) float32.  params: PyTorch-layout weights/biases."""
    w0, b0 = params["w0"], params["b0"]   # (hid, in),  (hid, 1)
    w1, b1 = params["w1"], params["b1"]   # (hid, hid), (hid, 1)
    w2, b2 = params["w2"], params["b2"]   # (out, hid), (out, 1)

    B, in_dim = r.shape
    hid = w0.shape[0]
    out_dim = w2.shape[0]

    # Batch tile: at least 128 lanes, at most block_b; pad B to a multiple.
    bb = min(block_b, _round_up(B, 128))
    Bp = _round_up(B, bb)
    grid = (Bp // bb,)

    # Lane-dense layout: batch on the lane axis.
    r_t = r.T                                              # (in_dim, B)
    if Bp != B:
        r_t = jnp.pad(r_t, ((0, 0), (0, Bp - B)))

    # Optional bf16 matmul inputs (v6e/v7x MXU fast path); accumulation and
    # softplus stay in f32 (important on v5e, which has no bf16 VPU/EUP).
    mm_dtype = jnp.bfloat16 if use_bf16 else r.dtype
    r_t = r_t.astype(mm_dtype)
    w0c, w1c, w2c = (w.astype(mm_dtype) for w in (w0, w1, w2))

    in_specs = [
        pl.BlockSpec((in_dim, bb), lambda i: (0, i)),      # activations: tiled
        pl.BlockSpec((hid, in_dim), lambda i: (0, 0)),     # weights/biases:
        pl.BlockSpec((hid, 1), lambda i: (0, 0)),          # constant index ->
        pl.BlockSpec((hid, hid), lambda i: (0, 0)),        # resident in VMEM,
        pl.BlockSpec((hid, 1), lambda i: (0, 0)),          # not re-DMA'd per
        pl.BlockSpec((out_dim, hid), lambda i: (0, 0)),    # grid step.
        pl.BlockSpec((out_dim, 1), lambda i: (0, 0)),
    ]
    out_spec = pl.BlockSpec((out_dim, bb), lambda i: (0, i))

    itemsize = jnp.dtype(mm_dtype).itemsize
    weight_bytes = sum(int(w.size) * itemsize for w in (w0c, w1c, w2c)) + \
        sum(int(b.size) * 4 for b in (b0, b1, b2))
    cost = pl.CostEstimate(
        flops=2 * Bp * (in_dim * hid + hid * hid + hid * out_dim),
        transcendentals=2 * 2 * Bp * hid,                  # exp + log, 2 layers
        bytes_accessed=Bp * in_dim * itemsize + Bp * out_dim * 4 + weight_bytes,
    )

    # Per-tile VMEM: bb*(in+hid+out)*4B (~230 KiB at bb=1024) plus tiny
    # weights, double-buffered -> far below default scoped VMEM everywhere,
    # so no vmem_limit_bytes override needed.
    out_t = pl.pallas_call(
        emitter_kernel,
        out_shape=jax.ShapeDtypeStruct((out_dim, Bp), jnp.float32),
        grid_spec=pltpu.PrefetchScalarGridSpec(
            num_scalar_prefetch=0,
            grid=grid,
            in_specs=in_specs,
            out_specs=out_spec,
        ),
        compiler_params=pltpu.CompilerParams(
            dimension_semantics=("parallel",),              # megacore on v7x
        ),
        cost_estimate=cost,
    )(r_t, w0c, b0, w1c, b1, w2c, b2)

    return out_t[:, :B].T                                   # back to (B, out_dim)


def init_params(key, input_dim, hidden_dim, output_dim):
    """nn.Linear-style init, PyTorch-native layout: W (out, in), b (out, 1)."""
    def linear(k, fan_in, fan_out):
        kw, kb = jax.random.split(k)
        bound = 1.0 / (fan_in ** 0.5)
        w = jax.random.uniform(kw, (fan_out, fan_in), jnp.float32, -bound, bound)
        b = jax.random.uniform(kb, (fan_out, 1), jnp.float32, -bound, bound)
        return w, b

    k0, k1, k2 = jax.random.split(key, 3)
    w0, b0 = linear(k0, input_dim, hidden_dim)    # input_layer
    w1, b1 = linear(k1, hidden_dim, hidden_dim)   # middle[0].Linear
    w2, b2 = linear(k2, hidden_dim, output_dim)   # output_layer
    return {"w0": w0, "b0": b0, "w1": w1, "b1": b1, "w2": w2, "b2": b2}


def reference_forward(r, params):
    x = jax.nn.softplus(r @ params["w0"].T + params["b0"][:, 0])
    x = jax.nn.softplus(x @ params["w1"].T + params["b1"][:, 0])
    return x @ params["w2"].T + params["b2"][:, 0]


if __name__ == "__main__":
    input_dim, hidden_dim, output_dim = 16, 32, 8
    batch = 200   # deliberately not a multiple of the tile -> exercises padding

    key = jax.random.PRNGKey(0)
    kp, kr = jax.random.split(key)
    params = init_params(kp, input_dim, hidden_dim, output_dim)
    r = jax.random.normal(kr, (batch, input_dim), jnp.float32)

    out = emitter_forward(r, params)           # default block_b=1024, f32
    out = jax.block_until_ready(out)

    ref = reference_forward(r, params)
    assert out.shape == (batch, output_dim)
    assert jnp.allclose(out, ref, atol=1e-5, rtol=1e-5), "mismatch vs reference"

    print("KERNEL_OK")
</pallas_src>

<mosaic_0001>
module attributes {stable_mosaic.version = 11 : i64} {
  func.func @emitter_kernel(%arg0: i32, %arg1: memref<16x256xf32, #tpu.memory_space<vmem>>, %arg2: memref<32x16xf32, #tpu.memory_space<vmem>>, %arg3: memref<32x1xf32, #tpu.memory_space<vmem>>, %arg4: memref<32x32xf32, #tpu.memory_space<vmem>>, %arg5: memref<32x1xf32, #tpu.memory_space<vmem>>, %arg6: memref<8x32xf32, #tpu.memory_space<vmem>>, %arg7: memref<8x1xf32, #tpu.memory_space<vmem>>, %arg8: memref<8x256xf32, #tpu.memory_space<vmem>>) attributes {dimension_semantics = [#tpu.dimension_semantics<parallel>], iteration_bounds = array<i64: 1>, scalar_prefetch = 0 : i64, scratch_operands = 0 : i64, tpu.core_type = #tpu.core_type<tc>, window_params = [{transform_indices = @transform_0, window_bounds = array<i64: 16, 256>}, {pipeline_mode = #tpu.pipeline_mode<synchronous>, transform_indices = @transform_1, window_bounds = array<i64: 32, 16>}, {pipeline_mode = #tpu.pipeline_mode<synchronous>, transform_indices = @transform_2, window_bounds = array<i64: 32, 1>}, {pipeline_mode = #tpu.pipeline_mode<synchronous>, transform_indices = @transform_3, window_bounds = array<i64: 32, 32>}, {pipeline_mode = #tpu.pipeline_mode<synchronous>, transform_indices = @transform_4, window_bounds = array<i64: 32, 1>}, {pipeline_mode = #tpu.pipeline_mode<synchronous>, transform_indices = @transform_5, window_bounds = array<i64: 8, 32>}, {pipeline_mode = #tpu.pipeline_mode<synchronous>, transform_indices = @transform_6, window_bounds = array<i64: 8, 1>}, {transform_indices = @transform_7, window_bounds = array<i64: 8, 256>}]} {
    %c0 = arith.constant 0 : index
    %c0_0 = arith.constant 0 : index
    %0 = vector.load %arg2[%c0, %c0_0] : memref<32x16xf32, #tpu.memory_space<vmem>>, vector<32x16xf32>
    %c0_1 = arith.constant 0 : index
    %c0_2 = arith.constant 0 : index
    %1 = vector.load %arg1[%c0_1, %c0_2] : memref<16x256xf32, #tpu.memory_space<vmem>>, vector<16x256xf32>
    %cst = arith.constant dense<0.000000e+00> : vector<32x256xf32>
    %2 = tpu.matmul %0, %1, %cst {dimension_numbers = #tpu.dot_dimension_numbers<[1], [0], [0], [1], [0, 0, 1, 1], [], []>} : vector<32x16xf32>, vector<16x256xf32>, vector<32x256xf32> -> vector<32x256xf32>
    %c0_3 = arith.constant 0 : index
    %c0_4 = arith.constant 0 : index
    %3 = vector.load %arg3[%c0_3, %c0_4] : memref<32x1xf32, #tpu.memory_space<vmem>>, vector<32x1xf32>
    %4 = vector.broadcast %3 : vector<32x1xf32> to vector<32x256xf32>
    %5 = arith.addf %2, %4 : vector<32x256xf32>
    %cst_5 = arith.constant 0.000000e+00 : f32
    %6 = vector.broadcast %cst_5 : f32 to vector<32x256xf32>
    %7 = arith.maximumf %5, %6 : vector<32x256xf32>
    %8 = math.absf %5 : vector<32x256xf32>
    %cst_6 = arith.constant 0.000000e+00 : f32
    %9 = vector.broadcast %cst_6 : f32 to vector<32x256xf32>
    %10 = arith.subf %9, %8 : vector<32x256xf32>
    %11 = math.exp %10 : vector<32x256xf32>
    %cst_7 = arith.constant 1.000000e+00 : f32
    %12 = vector.broadcast %cst_7 : f32 to vector<32x256xf32>
    %13 = arith.addf %12, %11 : vector<32x256xf32>
    %14 = math.log %13 : vector<32x256xf32>
    %15 = arith.addf %7, %14 : vector<32x256xf32>
    %c0_8 = arith.constant 0 : index
    %c0_9 = arith.constant 0 : index
    %16 = vector.load %arg4[%c0_8, %c0_9] : memref<32x32xf32, #tpu.memory_space<vmem>>, vector<32x32xf32>
    %cst_10 = arith.constant dense<0.000000e+00> : vector<32x256xf32>
    %17 = tpu.matmul %16, %15, %cst_10 {dimension_numbers = #tpu.dot_dimension_numbers<[1], [0], [0], [1], [0, 0, 1, 1], [], []>} : vector<32x32xf32>, vector<32x256xf32>, vector<32x256xf32> -> vector<32x256xf32>
    %c0_11 = arith.constant 0 : index
    %c0_12 = arith.constant 0 : index
    %18 = vector.load %arg5[%c0_11, %c0_12] : memref<32x1xf32, #tpu.memory_space<vmem>>, vector<32x1xf32>
    %19 = vector.broadcast %18 : vector<32x1xf32> to vector<32x256xf32>
    %20 = arith.addf %17, %19 : vector<32x256xf32>
    %cst_13 = arith.constant 0.000000e+00 : f32
    %21 = vector.broadcast %cst_13 : f32 to vector<32x256xf32>
    %22 = arith.maximumf %20, %21 : vector<32x256xf32>
    %23 = math.absf %20 : vector<32x256xf32>
    %cst_14 = arith.constant 0.000000e+00 : f32
    %24 = vector.broadcast %cst_14 : f32 to vector<32x256xf32>
    %25 = arith.subf %24, %23 : vector<32x256xf32>
    %26 = math.exp %25 : vector<32x256xf32>
    %cst_15 = arith.constant 1.000000e+00 : f32
    %27 = vector.broadcast %cst_15 : f32 to vector<32x256xf32>
    %28 = arith.addf %27, %26 : vector<32x256xf32>
    %29 = math.log %28 : vector<32x256xf32>
    %30 = arith.addf %22, %29 : vector<32x256xf32>
    %c0_16 = arith.constant 0 : index
    %c0_17 = arith.constant 0 : index
    %31 = vector.load %arg6[%c0_16, %c0_17] : memref<8x32xf32, #tpu.memory_space<vmem>>, vector<8x32xf32>
    %cst_18 = arith.constant dense<0.000000e+00> : vector<8x256xf32>
    %32 = tpu.matmul %31, %30, %cst_18 {dimension_numbers = #tpu.dot_dimension_numbers<[1], [0], [0], [1], [0, 0, 1, 1], [], []>} : vector<8x32xf32>, vector<32x256xf32>, vector<8x256xf32> -> vector<8x256xf32>
    %c0_19 = arith.constant 0 : index
    %c0_20 = arith.constant 0 : index
    %33 = vector.load %arg7[%c0_19, %c0_20] : memref<8x1xf32, #tpu.memory_space<vmem>>, vector<8x1xf32>
    %34 = vector.broadcast %33 : vector<8x1xf32> to vector<8x256xf32>
    %35 = arith.addf %32, %34 : vector<8x256xf32>
    %c0_21 = arith.constant 0 : index
    %c0_22 = arith.constant 0 : index
    %36 = vector.load %arg8[%c0_21, %c0_22] : memref<8x256xf32, #tpu.memory_space<vmem>>, vector<8x256xf32>
    tpu.vector_store %arg8[%c0_21, %c0_22], %35 {strides = array<i32>} : memref<8x256xf32, #tpu.memory_space<vmem>>, vector<8x256xf32>,
    return
  }
  func.func @transform_0(%arg0: i32) -> (i32, i32) {
    %c0_i32 = arith.constant 0 : i32
    %c0_i32_0 = arith.constant 0 : i32
    return %c0_i32, %arg0 : i32, i32
  }
  func.func @transform_1(%arg0: i32) -> (i32, i32) {
    %c0_i32 = arith.constant 0 : i32
    %c0_i32_0 = arith.constant 0 : i32
    %c0_i32_1 = arith.constant 0 : i32
    return %c0_i32, %c0_i32_0 : i32, i32
  }
  func.func @transform_2(%arg0: i32) -> (i32, i32) {
    %c0_i32 = arith.constant 0 : i32
    %c0_i32_0 = arith.constant 0 : i32
    %c0_i32_1 = arith.constant 0 : i32
    return %c0_i32, %c0_i32_0 : i32, i32
  }
  func.func @transform_3(%arg0: i32) -> (i32, i32) {
    %c0_i32 = arith.constant 0 : i32
    %c0_i32_0 = arith.constant 0 : i32
    %c0_i32_1 = arith.constant 0 : i32
    return %c0_i32, %c0_i32_0 : i32, i32
  }
  func.func @transform_4(%arg0: i32) -> (i32, i32) {
    %c0_i32 = arith.constant 0 : i32
    %c0_i32_0 = arith.constant 0 : i32
    %c0_i32_1 = arith.constant 0 : i32
    return %c0_i32, %c0_i32_0 : i32, i32
  }
  func.func @transform_5(%arg0: i32) -> (i32, i32) {
    %c0_i32 = arith.constant 0 : i32
    %c0_i32_0 = arith.constant 0 : i32
    %c0_i32_1 = arith.constant 0 : i32
    return %c0_i32, %c0_i32_0 : i32, i32
  }
  func.func @transform_6(%arg0: i32) -> (i32, i32) {
    %c0_i32 = arith.constant 0 : i32
    %c0_i32_0 = arith.constant 0 : i32
    %c0_i32_1 = arith.constant 0 : i32
    return %c0_i32, %c0_i32_0 : i32, i32
  }
  func.func @transform_7(%arg0: i32) -> (i32, i32) {
    %c0_i32 = arith.constant 0 : i32
    %c0_i32_0 = arith.constant 0 : i32
    return %c0_i32, %arg0 : i32, i32
  }
}

</mosaic_0001>

<bundles_post_ra>
// kernel: emitter_forward.1
= control target key start
LH: loop header
LB: loop body
LE: loop exit
PB: predicated region body
PF: predicated region fallthrough
CT: control target
= control target key end

     0   :  { %v618_v3 = vmov 0.0   ;;  %v619_v4 = vmov 0   ;;  %vm58_vm0 = vcmask 130048   ;;  %vm260_vm1 = vcmask 261120   ;;  %s814_s0 = inlined_call_operand.vmem [shape: f32[16,256], index: 0, kind: input, shape index: {}]   ;;  %s815_s2 = inlined_call_operand.vmem [shape: f32[32,1], index: 2, kind: input, shape index: {}]   ;;  %s816_s1 = inlined_call_operand.vmem [shape: f32[32,16], index: 1, kind: input, shape index: {}]   ;;  %s817_s4 = inlined_call_operand.vmem [shape: f32[32,1], index: 4, kind: input, shape index: {}]   ;;  %s818_s6 = inlined_call_operand.vmem [shape: f32[8,1], index: 6, kind: input, shape index: {}]   ;;  %s819_s3 = inlined_call_operand.vmem [shape: f32[32,32], index: 3, kind: input, shape index: {}]   ;;  %s820_s5 = inlined_call_operand.vmem [shape: f32[8,32], index: 5, kind: input, shape index: {}]   ;;  %s821_s7 = inlined_call_operand.vmem [shape: f32[8,256], index: 7, kind: output, shape index: {}]  }
   0x1   :  { %v31_v0 = vld [vmem:[%s814_s0 + $0x8] sm:$0xff]  ;;  %v33_v1 = vld [vmem:[%s814_s0 + $0x18] sm:$0xff]  ;;  %v30_v2 = vld [vmem:[%s814_s0] sm:$0xff]  ;;  %135 = vmatprep.mubr.f32.mxu0 %v618_v3  ;;  %552 = vset.pattern.permute.xlu0 %v619_v4 }
   0x2   :  { %v530_v5 = vpack.c.bf16 %v33_v1, %v31_v0  ;;  %v32_v6 = vld [vmem:[%s814_s0 + $0x10] sm:$0xff]  ;;  %553 = vset.pattern.permute.xlu1 %v619_v4  ;;  %337 = vmatprep.mubr.f32.mxu1 %v618_v3  ;;  %v34_v8 = vld [vmem:[%s815_s2] sm:$0xff]  ;;  %v35_v11 = vld [vmem:[%s815_s2 + $0x8] sm:$0xff] }
   0x3   :  { %v532_v7 = vpack.c.bf16 %v32_v6, %v30_v2  ;;  %40 = vperm.xlu0 %552, %v34_v8   ;;  %v36_v9 = vld [vmem:[%s815_s2 + $0x10] sm:$0xff]  ;;  %v26_v10 = vld [vmem:[%s816_s1] sm:$0xff]  ;;  %v37_v12 = vld [vmem:[%s815_s2 + $0x18] sm:$0xff] }
   0x4   :  { %531 = vmatprep.subr.bf16.mxu0 %v530_v5  ;;  %50 = vperm.xlu1 %553, %v36_v9   ;;  %v27_v13 = vld [vmem:[%s816_s1 + $0x8] sm:$0xff]  ;;  %v236_v14 = vld [vmem:[%s817_s4] sm:$0xff]  ;;  %v28_v16 = vld [vmem:[%s816_s1 + $0x10] sm:$0xff] }
   0x5   :  { %533 = vmatpush1.bf16.msra.mxu0 %v532_v7  ;;  %v237_v15 = vld [vmem:[%s817_s4 + $0x8] sm:$0xff]  ;;  %v238_v17 = vld [vmem:[%s817_s4 + $0x10] sm:$0xff]  ;;  %v239_v18 = vld [vmem:[%s817_s4 + $0x18] sm:$0xff] }
   0x6   :  { %v29_v19 = vld [vmem:[%s816_s1 + $0x18] sm:$0xff]  ;;  %v435_v20 = vld [vmem:[%s818_s6] sm:$0xff] }
   0x7   :  { %45 = vperm.xlu0 %552, %v35_v11  }
   0x8   :  { %521 = vmatmul.mubr.msk.f32.vlgmr.msra.gmra.mrb[0].mxu0 %vm58_vm0, %v26_v10  ;;  %55 = vperm.xlu1 %553, %v37_v12  }
   0x9   :  { %141 = vmatprep.mubr.f32.mxu0 %v618_v3 }
   0xb   :  { %242 = vperm.xlu0 %552, %v236_v14  }
   0xc   :  { %522 = vmatmul.mubr.msk.f32.gmra.mrb[2].mxu0 %vm58_vm0, %v27_v13  ;;  %247 = vperm.xlu1 %553, %v237_v15  }
   0xd   :  { %147 = vmatprep.mubr.f32.mxu0 %v618_v3 }
   0xf   :  { %252 = vperm.xlu0 %552, %v238_v17  }
  0x10   :  { %523 = vmatmul.mubr.msk.f32.gmra.mrb[4].mxu0 %vm58_vm0, %v28_v16  ;;  %257 = vperm.xlu1 %553, %v239_v18  }
  0x11   :  { %153 = vmatprep.mubr.f32.mxu0 %v618_v3 }
  0x13   :  { %438 = vperm.xlu0 %552, %v435_v20  }
  0x14   :  { %524 = vmatmul.mubr.msk.f32.gmra.mrb[6].mxu0 %vm58_vm0, %v29_v19 }
  0x15   :  { %508 = vmatprep.mubr.f32.mxu0 %v618_v3 }
  0x82   :  { %v41_v21 = vpop.permute.xlu0 %40 }
  0x83   :  { %v51_v33 = vpop.permute.xlu1 %50 }
  0x86   :  { %v46_v27 = vpop.permute.xlu0 %45 }
  0x87   :  { %v56_v48 = vpop.permute.xlu1 %55 }
  0xdb   :  { %v137_v22 = vpop.f32.mrb[0].mxu0 }
  0xdc   :  { %v721_v23 = vadd.f32 %v137_v22, %v41_v21  ;;  %v139_v24 = vpop.f32.mrb[1].mxu0 }
  0xdd   :  { %v723_v25 = vadd.f32 %v139_v24, %v41_v21 }
  0xde   :  { %v168_v26 = vand.u32 2147483647, %v721_v23 }
  0xdf   :  { %v169_v28 = vand.u32 2147483647, %v723_v25  ;;  %v143_v29 = vpop.f32.mrb[2].mxu0 }
  0xe0   :  { %v176_v30 = vsub.f32 0.0, %v168_v26  ;;  %v727_v31 = vadd.f32 %v143_v29, %v46_v27  ;;  %v145_v32 = vpop.f32.mrb[3].mxu0  ;;  %v160_v26 = vmax.f32 %v721_v23, 0.0  ;;  %v161_v29 = vmax.f32 %v723_v25, 0.0 }
  0xe1   :  { %v177_v34 = vsub.f32 0.0, %v169_v28  ;;  %v729_v35 = vadd.f32 %v145_v32, %v46_v27 }
  0xe2   :  { %v184_v36 = vmul.f32 1.442695, %v176_v30  ;;  %v170_v37 = vand.u32 2147483647, %v727_v31  ;;  %v162_v27 = vmax.f32 %v727_v31, 0.0 }
  0xe3   :  { %v186_v38 = vmul.f32 1.442695, %v177_v34  ;;  %v171_v39 = vand.u32 2147483647, %v729_v35  ;;  %v149_v40 = vpop.f32.mrb[4].mxu0  ;;  %v163_v30 = vmax.f32 %v729_v35, 0.0 }
  0xe4   :  { %554 = vpow2.f32 %v184_v36  ;;  %v178_v41 = vsub.f32 0.0, %v170_v37  ;;  %v733_v42 = vadd.f32 %v149_v40, %v51_v33  ;;  %v151_v43 = vpop.f32.mrb[5].mxu0 }
  0xe5   :  { %556 = vpow2.f32 %v186_v38  ;;  %v179_v44 = vsub.f32 0.0, %v171_v39  ;;  %v735_v45 = vadd.f32 %v151_v43, %v51_v33 }
  0xe6   :  { %v188_v46 = vmul.f32 1.442695, %v178_v41  ;;  %v172_v47 = vand.u32 2147483647, %v733_v42  ;;  %v164_v23 = vmax.f32 %v733_v42, 0.0  ;;  %v232_v42 = vld [vmem:[%s819_s3] sm:$0xff] }
  0xe7   :  { %v190_v49 = vmul.f32 1.442695, %v179_v44  ;;  %v173_v50 = vand.u32 2147483647, %v735_v45  ;;  %v155_v51 = vpop.f32.mrb[6].mxu0 }
  0xe8   :  { %558 = vpow2.f32 %v188_v46  ;;  %v180_v52 = vsub.f32 0.0, %v172_v47  ;;  %v739_v53 = vadd.f32 %v155_v51, %v56_v48  ;;  %v157_v54 = vpop.f32.mrb[7].mxu0  ;;  %v165_v47 = vmax.f32 %v735_v45, 0.0  ;;  %v233_v45 = vld [vmem:[%s819_s3 + $0x8] sm:$0xff] }
  0xe9   :  { %560 = vpow2.f32 %v190_v49  ;;  %v181_v55 = vsub.f32 0.0, %v173_v50  ;;  %v741_v56 = vadd.f32 %v157_v54, %v56_v48 }
  0xea   :  { %v192_v57 = vmul.f32 1.442695, %v180_v52  ;;  %v174_v58 = vand.u32 2147483647, %v739_v53  ;;  %v166_v46 = vmax.f32 %v739_v53, 0.0  ;;  %v234_v53 = vld [vmem:[%s819_s3 + $0x10] sm:$0xff] }
  0xeb   :  { %v194_v59 = vmul.f32 1.442695, %v181_v55  ;;  %v175_v60 = vand.u32 2147483647, %v741_v56  ;;  %v167_v50 = vmax.f32 %v741_v56, 0.0  ;;  %v235_v56 = vld [vmem:[%s819_s3 + $0x18] sm:$0xff] }
  0xec   :  { %562 = vpow2.f32 %v192_v57  ;;  %v182_v61 = vsub.f32 0.0, %v174_v58  ;;  %v243_v58 = vpop.permute.xlu0 %242 }
  0xed   :  { %564 = vpow2.f32 %v194_v59  ;;  %v183_v62 = vsub.f32 0.0, %v175_v60 }
  0xee   :  { %v555_v63 = vpop.eup %554  ;;  %v196_v0 = vmul.f32 1.442695, %v182_v61 }
  0xef   :  { %v557_v1 = vpop.eup %556  ;;  %v200_v2 = vadd.f32 1.0, %v555_v63  ;;  %v198_v4 = vmul.f32 1.442695, %v183_v62 }
  0xf0   :  { %v201_v5 = vadd.f32 1.0, %v557_v1  ;;  %566 = vpow2.f32 %v196_v0  ;;  %v248_v0 = vpop.permute.xlu1 %247 }
  0xf1   :  { %568 = vlog2.f32 %v200_v2 }
  0xf2   :  { %v559_v6 = vpop.eup %558  ;;  %570 = vpow2.f32 %v198_v4 }
  0xf3   :  { %v561_v7 = vpop.eup %560  ;;  %v202_v8 = vadd.f32 1.0, %v559_v6  ;;  %572 = vlog2.f32 %v201_v5 }
  0xf4   :  { %v203_v9 = vadd.f32 1.0, %v561_v7 }
  0xf5   :  { %574 = vlog2.f32 %v202_v8 }
  0xf6   :  { %v563_v10 = vpop.eup %562  ;;  %576 = vlog2.f32 %v203_v9 }
  0xf7   :  { %v565_v11 = vpop.eup %564  ;;  %v204_v12 = vadd.f32 1.0, %v563_v10  ;;  %v253_v10 = vpop.permute.xlu0 %252 }
  0xf8   :  { %v205_v13 = vadd.f32 1.0, %v565_v11 }
  0xf9   :  { %578 = vlog2.f32 %v204_v12 }
  0xfa   :  { %v567_v14 = vpop.eup %566  ;;  %580 = vlog2.f32 %v205_v13 }
  0xfb   :  { %v569_v15 = vpop.eup %568  ;;  %v206_v16 = vadd.f32 1.0, %v567_v14 }
  0xfc   :  { %v571_v17 = vpop.eup %570  ;;  %v209_v20 = vmul.f32 0.6931472, %v569_v15 }
  0xfd   :  { %v573_v18 = vpop.eup %572  ;;  %582 = vlog2.f32 %v206_v16  ;;  %v207_v19 = vadd.f32 1.0, %v571_v17 }
  0xfe   :  { %v211_v22 = vmul.f32 0.6931472, %v573_v18  ;;  %v224_v33 = vadd.f32 %v209_v20, %v160_v26 }
  0xff   :  { %v575_v21 = vpop.eup %574  ;;  %584 = vlog2.f32 %v207_v19 }
 0x100   :  { %v577_v24 = vpop.eup %576  ;;  %v213_v28 = vmul.f32 0.6931472, %v575_v21  ;;  %v225_v37 = vadd.f32 %v211_v22, %v161_v29  ;;  %v258_v21 = vpop.permute.xlu1 %257 }
 0x101   :  { %v215_v32 = vmul.f32 0.6931472, %v577_v24 }
 0x102   :  { %v226_v34 = vadd.f32 %v213_v28, %v162_v27 }
 0x103   :  { %v579_v36 = vpop.eup %578  ;;  %v227_v38 = vadd.f32 %v215_v32, %v163_v30 }
 0x104   :  { %v536_v39 = vpack.c.bf16 %v226_v34, %v224_v33  ;;  %v581_v40 = vpop.eup %580  ;;  %v217_v43 = vmul.f32 0.6931472, %v579_v36 }
 0x105   :  { %v534_v41 = vpack.c.bf16 %v227_v38, %v225_v37  ;;  %v219_v31 = vmul.f32 0.6931472, %v581_v40 }
 0x106   :  { %v228_v48 = vadd.f32 %v217_v43, %v164_v23 }
 0x107   :  { %v583_v44 = vpop.eup %582  ;;  %535 = vmatprep.subr.bf16.mxu1 %v534_v41  ;;  %v229_v52 = vadd.f32 %v219_v31, %v165_v47 }
 0x108   :  { %v221_v25 = vmul.f32 0.6931472, %v583_v44  ;;  %537 = vmatpush1.bf16.msra.mxu1 %v536_v39 }
 0x109   :  { %v585_v35 = vpop.eup %584 }
 0x10a   :  { %v230_v49 = vadd.f32 %v221_v25, %v166_v46  ;;  %v223_v51 = vmul.f32 0.6931472, %v585_v35 }
 0x10c   :  { %v231_v54 = vadd.f32 %v223_v51, %v167_v50  ;;  %v540_v55 = vpack.c.bf16 %v230_v49, %v228_v48 }
 0x10e   :  { %v538_v57 = vpack.c.bf16 %v231_v54, %v229_v52 }
 0x110   :  { %539 = vmatprep.subr.bf16.mxu1 %v538_v57 }
 0x111   :  { %541 = vmatpush1.bf16.msra.mxu1 %v540_v55 }
 0x114   :  { %525 = vmatmul.mubr.msk.f32.vlgmr.msra.gmra.mrb[0].mxu1 %vm260_vm1, %v232_v42 }
 0x115   :  { %343 = vmatprep.mubr.f32.mxu1 %v618_v3 }
 0x118   :  { %526 = vmatmul.mubr.msk.f32.gmra.mrb[2].mxu1 %vm260_vm1, %v233_v45 }
 0x119   :  { %349 = vmatprep.mubr.f32.mxu1 %v618_v3 }
 0x11c   :  { %527 = vmatmul.mubr.msk.f32.gmra.mrb[4].mxu1 %vm260_vm1, %v234_v53 }
 0x11d   :  { %355 = vmatprep.mubr.f32.mxu1 %v618_v3 }
 0x120   :  { %528 = vmatmul.mubr.msk.f32.gmra.mrb[6].mxu1 %vm260_vm1, %v235_v56 }
 0x1e7   :  { %v339_v59 = vpop.f32.mrb[0].mxu1 }
 0x1e8   :  { %v772_v60 = vadd.f32 %v339_v59, %v243_v58  ;;  %v341_v61 = vpop.f32.mrb[1].mxu1 }
 0x1e9   :  { %v774_v62 = vadd.f32 %v341_v61, %v243_v58 }
 0x1ea   :  { %v370_v63 = vand.u32 2147483647, %v772_v60  ;;  %v362_v61 = vmax.f32 %v772_v60, 0.0 }
 0x1eb   :  { %v371_v1 = vand.u32 2147483647, %v774_v62  ;;  %v345_v2 = vpop.f32.mrb[2].mxu1 }
 0x1ec   :  { %v378_v3 = vsub.f32 0.0, %v370_v63  ;;  %v778_v4 = vadd.f32 %v345_v2, %v248_v0  ;;  %v347_v5 = vpop.f32.mrb[3].mxu1 }
 0x1ed   :  { %v379_v6 = vsub.f32 0.0, %v371_v1  ;;  %v780_v7 = vadd.f32 %v347_v5, %v248_v0  ;;  %v363_v1 = vmax.f32 %v774_v62, 0.0 }
 0x1ee   :  { %v386_v8 = vmul.f32 1.442695, %v378_v3  ;;  %v372_v9 = vand.u32 2147483647, %v778_v4  ;;  %v364_v63 = vmax.f32 %v778_v4, 0.0 }
 0x1ef   :  { %v388_v11 = vmul.f32 1.442695, %v379_v6  ;;  %v373_v12 = vand.u32 2147483647, %v780_v7  ;;  %v351_v13 = vpop.f32.mrb[4].mxu1  ;;  %v365_v2 = vmax.f32 %v780_v7, 0.0 }
 0x1f0   :  { %586 = vpow2.f32 %v386_v8  ;;  %v380_v14 = vsub.f32 0.0, %v372_v9  ;;  %v784_v15 = vadd.f32 %v351_v13, %v253_v10  ;;  %v353_v16 = vpop.f32.mrb[5].mxu1 }
 0x1f1   :  { %588 = vpow2.f32 %v388_v11  ;;  %v381_v17 = vsub.f32 0.0, %v373_v12  ;;  %v786_v18 = vadd.f32 %v353_v16, %v253_v10 }
 0x1f2   :  { %v390_v19 = vmul.f32 1.442695, %v380_v14  ;;  %v374_v20 = vand.u32 2147483647, %v784_v15  ;;  %v366_v60 = vmax.f32 %v784_v15, 0.0  ;;  %v434_v15 = vld [vmem:[%s820_s5] sm:$0xff] }
 0x1f3   :  { %v392_v22 = vmul.f32 1.442695, %v381_v17  ;;  %v375_v24 = vand.u32 2147483647, %v786_v18  ;;  %v357_v26 = vpop.f32.mrb[6].mxu1 }
 0x1f4   :  { %590 = vpow2.f32 %v390_v19  ;;  %v382_v27 = vsub.f32 0.0, %v374_v20  ;;  %v790_v28 = vadd.f32 %v357_v26, %v258_v21  ;;  %v359_v29 = vpop.f32.mrb[7].mxu1 }
 0x1f5   :  { %592 = vpow2.f32 %v392_v22  ;;  %v383_v30 = vsub.f32 0.0, %v375_v24  ;;  %v792_v32 = vadd.f32 %v359_v29, %v258_v21  ;;  %v367_v21 = vmax.f32 %v786_v18, 0.0 }
 0x1f6   :  { %v394_v33 = vmul.f32 1.442695, %v382_v27  ;;  %v376_v34 = vand.u32 2147483647, %v790_v28  ;;  %v368_v4 = vmax.f32 %v790_v28, 0.0  ;;  %v439_v28 = vpop.permute.xlu0 %438 }
 0x1f7   :  { %v396_v36 = vmul.f32 1.442695, %v383_v30  ;;  %v377_v37 = vand.u32 2147483647, %v792_v32  ;;  %v369_v22 = vmax.f32 %v792_v32, 0.0 }
 0x1f8   :  { %594 = vpow2.f32 %v394_v33  ;;  %v384_v38 = vsub.f32 0.0, %v376_v34 }
 0x1f9   :  { %596 = vpow2.f32 %v396_v36  ;;  %v385_v39 = vsub.f32 0.0, %v377_v37 }
 0x1fa   :  { %v587_v40 = vpop.eup %586  ;;  %v398_v41 = vmul.f32 1.442695, %v384_v38 }
 0x1fb   :  { %v589_v43 = vpop.eup %588  ;;  %v402_v44 = vadd.f32 1.0, %v587_v40  ;;  %v400_v23 = vmul.f32 1.442695, %v385_v39 }
 0x1fc   :  { %v403_v31 = vadd.f32 1.0, %v589_v43  ;;  %598 = vpow2.f32 %v398_v41 }
 0x1fd   :  { %600 = vlog2.f32 %v402_v44 }
 0x1fe   :  { %v591_v46 = vpop.eup %590  ;;  %602 = vlog2.f32 %v403_v31 }
 0x1ff   :  { %v593_v25 = vpop.eup %592  ;;  %v404_v35 = vadd.f32 1.0, %v591_v46  ;;  %604 = vpow2.f32 %v400_v23 }
 0x200   :  { %v405_v47 = vadd.f32 1.0, %v593_v25 }
 0x201   :  { %606 = vlog2.f32 %v404_v35 }
 0x202   :  { %v595_v48 = vpop.eup %594  ;;  %608 = vlog2.f32 %v405_v47 }
 0x203   :  { %v597_v49 = vpop.eup %596  ;;  %v406_v50 = vadd.f32 1.0, %v595_v48 }
 0x204   :  { %v407_v51 = vadd.f32 1.0, %v597_v49 }
 0x205   :  { %610 = vlog2.f32 %v406_v50 }
 0x206   :  { %v599_v52 = vpop.eup %598  ;;  %612 = vlog2.f32 %v407_v51 }
 0x207   :  { %v601_v54 = vpop.eup %600  ;;  %v408_v55 = vadd.f32 1.0, %v599_v52 }
 0x208   :  { %v603_v57 = vpop.eup %602  ;;  %v411_v45 = vmul.f32 0.6931472, %v601_v54 }
 0x209   :  { %v605_v42 = vpop.eup %604  ;;  %614 = vlog2.f32 %v408_v55  ;;  %v413_v58 = vmul.f32 0.6931472, %v603_v57 }
 0x20a   :  { %v409_v53 = vadd.f32 1.0, %v605_v42  ;;  %v426_v5 = vadd.f32 %v411_v45, %v362_v61 }
 0x20b   :  { %v607_v56 = vpop.eup %606  ;;  %v427_v9 = vadd.f32 %v413_v58, %v363_v1 }
 0x20c   :  { %v609_v59 = vpop.eup %608  ;;  %v415_v0 = vmul.f32 0.6931472, %v607_v56  ;;  %616 = vlog2.f32 %v409_v53 }
 0x20d   :  { %v417_v3 = vmul.f32 0.6931472, %v609_v59 }
 0x20e   :  { %v428_v6 = vadd.f32 %v415_v0, %v364_v63 }
 0x20f   :  { %v611_v8 = vpop.eup %610  ;;  %v429_v10 = vadd.f32 %v417_v3, %v365_v2 }
 0x210   :  { %v544_v11 = vpack.c.bf16 %v428_v6, %v426_v5  ;;  %v613_v13 = vpop.eup %612  ;;  %v419_v14 = vmul.f32 0.6931472, %v611_v8 }
 0x211   :  { %v542_v12 = vpack.c.bf16 %v429_v10, %v427_v9  ;;  %v421_v62 = vmul.f32 0.6931472, %v613_v13 }
 0x212   :  { %v430_v19 = vadd.f32 %v419_v14, %v366_v60 }
 0x213   :  { %v615_v16 = vpop.eup %614  ;;  %543 = vmatprep.subr.bf16.mxu0 %v542_v12  ;;  %v431_v27 = vadd.f32 %v421_v62, %v367_v21 }
 0x214   :  { %v423_v17 = vmul.f32 0.6931472, %v615_v16  ;;  %545 = vmatpush1.bf16.msra.mxu0 %v544_v11 }
 0x216   :  { %v617_v7 = vpop.eup %616  ;;  %v432_v20 = vadd.f32 %v423_v17, %v368_v4 }
 0x217   :  { %v425_v24 = vmul.f32 0.6931472, %v617_v7 }
 0x218   :  { %v548_v26 = vpack.c.bf16 %v432_v20, %v430_v19 }
 0x219   :  { %v433_v29 = vadd.f32 %v425_v24, %v369_v22 }
 0x21b   :  { %v546_v30 = vpack.c.bf16 %v433_v29, %v431_v27 }
 0x21d   :  { %547 = vmatprep.subr.bf16.mxu0 %v546_v30 }
 0x21e   :  { %549 = vmatpush1.bf16.msra.mxu0 %v548_v26 }
 0x221   :  { %529 = vmatmul.mubr.msk.f32.vlgmr.msra.gmra.mrb[8].mxu0 %vm260_vm1, %v434_v15 }
 0x2f4   :  { %v510_v33 = vpop.f32.mrb[8].mxu0 }
 0x2f5   :  { %v511_v34 = vadd.f32 %v510_v33, %v439_v28  ;;  %v512_v36 = vpop.f32.mrb[9].mxu0 }
 0x2f6   :  { %v513_v18 = vadd.f32 %v512_v36, %v439_v28 }
 0x2f7   :  { %515 = vst [vmem:[%s821_s7] sm:$0xff] %v511_v34 }
 0x2f8   :  { %516 = vst [vmem:[%s821_s7 + $0x8] sm:$0xff] %v513_v18 }

</bundles_post_ra>
